<compile_context>
chip_gen: v5e
topology: v5e:2x2
jax: 0.10.0
libtpu: 0.0.40
codegen_flags: <defaults>
</compile_context>

<pallas_src>
import functools

import jax
import jax.numpy as jnp
from jax.experimental import pallas as pl
from jax.experimental.pallas import tpu as pltpu

_MAX_BLOCK_B = 2048  # tiles >= ~512 rows already reach ~85% of HBM roofline


def _cdiv(a, b):
    return -(-a // b)


def _round_up(a, b):
    return _cdiv(a, b) * b


def _tpu_defaults():
    """Generation-aware defaults: (pred VMEM budget, num core shards, vmem cap)."""
    try:
        info = pltpu.get_tpu_info()
        vmem = int(getattr(info, "vmem_capacity_bytes", 0) or 0)
    except Exception:  # unknown backend / interpret mode -> conservative
        vmem = 0
    if vmem and vmem <= 80 * 1024 * 1024:
        # v7x-class: 64 MiB VMEM per TensorCore, 2 TensorCores per chip.
        return 8 * 1024 * 1024, 2, 48 * 1024 * 1024
    # v5e / v6e (128 MiB VMEM, single TensorCore) or unknown backend.
    return 16 * 1024 * 1024, 1, 64 * 1024 * 1024


def _ls_ce_kernel(pred_ref, tgt_ref, loss_out_ref, count_out_ref, *,
                  ignore_index, smoothing, num_classes, batch, block_b,
                  n_inner):
    c = pl.program_id(0)      # core-shard axis ("parallel")
    i = pl.program_id(1)      # batch-block axis ("arbitrary" / reduction)

    # Outputs double as accumulators (block index constant across i).
    @pl.when(i == 0)
    def _():
        loss_out_ref[...] = jnp.zeros_like(loss_out_ref)
        count_out_ref[...] = jnp.zeros_like(count_out_ref)

    x = pred_ref[...].astype(jnp.float32)                       # [TB, C]
    tb = x.shape[0]
    tgt = tgt_ref[...]                                          # [TB, 1] int32

    # log-softmax pieces (never materializes the full logp tile).
    m = jnp.max(x, axis=-1, keepdims=True)                      # [TB, 1]
    shifted = x - m
    # TODO(synk): on v7x, consider computing exp in bf16 if the single EUP slot
    # binds before HBM bandwidth; kept f32 here for exactness on all chips.
    lse = jnp.log(jnp.sum(jnp.exp(shifted), axis=-1, keepdims=True))

    # Fused smoothed target distribution.  With w[t]=confidence and
    # w[other]=smoothing/(C-1) we have sum(w)==1, hence
    #   loss = -sum(w * (shifted - lse)) = lse - sum(w * shifted).
    # (smoothing == 0 degenerates exactly to nll_loss(log_softmax(pred)).)
    confidence = 1.0 - smoothing
    smooth_w = smoothing / max(num_classes - 1, 1)
    cls = jax.lax.broadcasted_iota(jnp.int32, (1, num_classes), 1)   # (1, C)
    w = jnp.where(cls == tgt, confidence, smooth_w)             # [TB, C]
    loss = lse - jnp.sum(shifted * w, axis=-1, keepdims=True)   # [TB, 1]

    # Row validity: (a) the logical row exists (ragged last block and clamped
    # padding grid points use the UNclamped block index here), (b) target !=
    # ignore_index.  Select (not multiply) so NaN/Inf garbage rows are dropped.
    blk = c * n_inner + i
    rows = blk * block_b + jax.lax.broadcasted_iota(jnp.int32, (tb, 1), 0)
    valid = jnp.logical_and(rows < batch, tgt != ignore_index)

    step_loss = jnp.sum(jnp.where(valid, loss, 0.0), axis=0, keepdims=True)  # [1,1]
    step_cnt = jnp.sum(valid.astype(jnp.float32), axis=0, keepdims=True)     # [1,1]

    # One vreg load/add/store per accumulator per step; broadcast over the
    # lane-dense (1, 8, 128) tile, wrapper reads [:, 0, 0].
    loss_out_ref[...] += step_loss
    count_out_ref[...] += step_cnt


def label_smoothing_cross_entropy(pred, target, *, ignore_index=-250,
                                  smoothing=0.0, reduction="mean",
                                  block_b=None, num_core_shards=None):
    """pred: [B, C] float logits, target: [B] int labels."""
    B, C = pred.shape
    itemsize = jnp.dtype(pred.dtype).itemsize
    # Sublane packing: 8 rows/vreg for 4-byte dtypes, 16 for bf16, 32 for 8-bit.
    pack = 8 * max(1, 4 // itemsize)

    pred_budget, default_shards, vmem_cap = _tpu_defaults()
    if num_core_shards is None:
        num_core_shards = default_shards

    if block_b is None:
        bb = pred_budget // (2 * C * itemsize)
        bb = max(pack, (bb // pack) * pack)
        bb = min(bb, _MAX_BLOCK_B)
        block_b = int(min(bb, _round_up(B, pack)))
    block_b = int(block_b)
    # TODO(synk): for vocab-scale C (>= ~32K) a class-axis grid with an online
    # (flash-style) log-softmax would be preferable to shrinking block_b.

    n_blocks = _cdiv(B, block_b)
    num_shards = max(1, min(int(num_core_shards), n_blocks))
    n_inner = _cdiv(n_blocks, num_shards)
    last_blk = n_blocks - 1

    # VMEM accounting: double-buffered pred tiles + f32 upcast/shifted/weight
    # intermediates + lane-padded (block_b, 1) target tiles + misc headroom.
    pred_bytes = 2 * block_b * C * itemsize
    f32_work = 3 * block_b * C * 4
    tgt_bytes = 2 * block_b * 128 * 4
    vmem_limit = pred_bytes + f32_work + tgt_bytes + (2 << 20)
    vmem_limit = int(min(max(vmem_limit, 8 << 20), vmem_cap))

    tgt2d = target.astype(jnp.int32).reshape(B, 1)

    kernel = functools.partial(
        _ls_ce_kernel,
        ignore_index=int(ignore_index),
        smoothing=float(smoothing),
        num_classes=int(C),
        batch=int(B),
        block_b=block_b,
        n_inner=int(n_inner),
    )

    def in_index_map(c, i):
        # Clamp so padded grid points re-read a valid block; their rows are
        # fully masked out by the row-validity check inside the kernel.
        return (jnp.minimum(c * n_inner + i, last_blk), 0)

    part_loss, part_cnt = pl.pallas_call(
        kernel,
        out_shape=(
            jax.ShapeDtypeStruct((num_shards, 8, 128), jnp.float32),
            jax.ShapeDtypeStruct((num_shards, 8, 128), jnp.float32),
        ),
        grid_spec=pltpu.PrefetchScalarGridSpec(
            num_scalar_prefetch=0,
            grid=(num_shards, n_inner),
            in_specs=[
                pl.BlockSpec((block_b, C), in_index_map),
                pl.BlockSpec((block_b, 1), in_index_map),
            ],
            out_specs=(
                pl.BlockSpec((1, 8, 128), lambda c, i: (c, 0, 0)),
                pl.BlockSpec((1, 8, 128), lambda c, i: (c, 0, 0)),
            ),
        ),
        compiler_params=pltpu.CompilerParams(
            dimension_semantics=("parallel", "arbitrary"),
            vmem_limit_bytes=vmem_limit,
        ),
    )(pred, tgt2d)

    loss_sum = jnp.sum(part_loss[:, 0, 0])
    count = jnp.sum(part_cnt[:, 0, 0])
    if reduction == "mean":
        # Matches PyTorch: NaN if every target equals ignore_index.
        return loss_sum / count
    elif reduction == "sum":
        return loss_sum
    # TODO(synk): reduction='none' returns loss[target != ignore_index], a
    # dynamically-shaped gather with no static-shape Pallas equivalent.
    raise NotImplementedError("reduction='none' not supported")


def _reference(pred, target, *, ignore_index, smoothing, reduction):
    """Pure-JAX reference mirroring the PyTorch module semantics."""
    logp = jax.nn.log_softmax(pred.astype(jnp.float32), axis=-1)
    C = pred.shape[1]
    conf = 1.0 - smoothing
    onehot = jax.nn.one_hot(target, C, dtype=jnp.float32)
    true_dist = jnp.full_like(logp, smoothing / max(C - 1, 1))
    true_dist = true_dist * (1.0 - onehot) + conf * onehot
    valid = (target != ignore_index)
    true_dist = jnp.where(valid[:, None], true_dist, 0.0)
    loss = -jnp.sum(true_dist * logp, axis=-1)
    if reduction == "mean":
        return jnp.sum(loss) / jnp.sum(valid.astype(jnp.float32))
    return jnp.sum(loss)


if __name__ == "__main__":
    key = jax.random.PRNGKey(0)
    k_pred, k_tgt, k_pred2, k_tgt2 = jax.random.split(key, 4)

    # Small demo shape matching the module: pred [batch, num_classes], target [batch].
    B, C = 8, 32
    ignore_index = 0                  # plays the role of tokenizer.pad_token_id
    smoothing = 0.1

    pred = jax.random.normal(k_pred, (B, C), dtype=jnp.float32)
    target = jax.random.randint(k_tgt, (B,), 1, C, dtype=jnp.int32)
    target = target.at[2].set(ignore_index)   # some ignored rows
    target = target.at[5].set(ignore_index)

    out = jax.block_until_ready(label_smoothing_cross_entropy(
        pred, target, ignore_index=ignore_index, smoothing=smoothing,
        reduction="mean"))
    ref = _reference(pred, target, ignore_index=ignore_index,
                     smoothing=smoothing, reduction="mean")
    assert jnp.allclose(out, ref, rtol=1e-5, atol=1e-5), (out, ref)

    # smoothing == 0 path (plain masked NLL), 'sum' reduction.
    out0 = jax.block_until_ready(label_smoothing_cross_entropy(
        pred, target, ignore_index=ignore_index, smoothing=0.0,
        reduction="sum"))
    ref0 = _reference(pred, target, ignore_index=ignore_index,
                      smoothing=0.0, reduction="sum")
    assert jnp.allclose(out0, ref0, rtol=1e-5, atol=1e-5), (out0, ref0)

    # Ragged batch + multi-block + explicit 2-shard path (exercises the clamped
    # index map, row-validity masking and the resident scalar accumulation).
    B2, C2 = 300, 128
    pred2 = jax.random.normal(k_pred2, (B2, C2), dtype=jnp.float32)
    target2 = jax.random.randint(k_tgt2, (B2,), 1, C2, dtype=jnp.int32)
    target2 = target2.at[7].set(ignore_index)
    target2 = target2.at[123].set(ignore_index)
    out2 = jax.block_until_ready(label_smoothing_cross_entropy(
        pred2, target2, ignore_index=ignore_index, smoothing=0.1,
        reduction="mean", block_b=64, num_core_shards=2))
    ref2 = _reference(pred2, target2, ignore_index=ignore_index,
                      smoothing=0.1, reduction="mean")
    assert jnp.allclose(out2, ref2, rtol=1e-4, atol=1e-5), (out2, ref2)

    print("KERNEL_OK")
</pallas_src>

<mosaic_0001>
module attributes {stable_mosaic.version = 11 : i64} {
  func.func @_ls_ce_kernel(%arg0: i32, %arg1: i32, %arg2: memref<8x32xf32, #tpu.memory_space<vmem>>, %arg3: memref<8x1xi32, #tpu.memory_space<vmem>>, %arg4: memref<1x8x128xf32, #tpu.memory_space<vmem>>, %arg5: memref<1x8x128xf32, #tpu.memory_space<vmem>>) attributes {dimension_semantics = [#tpu.dimension_semantics<parallel>, #tpu.dimension_semantics<arbitrary>], iteration_bounds = array<i64: 1, 1>, scalar_prefetch = 0 : i64, scratch_operands = 0 : i64, tpu.core_type = #tpu.core_type<tc>, window_params = [{transform_indices = @transform_0, window_bounds = array<i64: 8, 32>}, {transform_indices = @transform_1, window_bounds = array<i64: 8, 1>}, {transform_indices = @transform_2, window_bounds = array<i64: 1, 8, 128>}, {transform_indices = @transform_3, window_bounds = array<i64: 1, 8, 128>}]} {
    %c0_i32 = arith.constant 0 : i32
    %0 = arith.cmpi eq, %arg1, %c0_i32 : i32
    %1 = arith.extui %0 : i1 to i32
    %c0_i32_0 = arith.constant 0 : i32
    %2 = arith.cmpi ne, %1, %c0_i32_0 : i32
    scf.if %2 {
      %cst_25 = arith.constant 0.000000e+00 : f32
      %53 = vector.broadcast %cst_25 : f32 to vector<1x8x128xf32>
      %c0_26 = arith.constant 0 : index
      %c0_27 = arith.constant 0 : index
      %c0_28 = arith.constant 0 : index
      %54 = vector.load %arg4[%c0_26, %c0_27, %c0_28] : memref<1x8x128xf32, #tpu.memory_space<vmem>>, vector<1x8x128xf32>
      tpu.vector_store %arg4[%c0_26, %c0_27, %c0_28], %53 {strides = array<i32>} : memref<1x8x128xf32, #tpu.memory_space<vmem>>, vector<1x8x128xf32>,
      %cst_29 = arith.constant 0.000000e+00 : f32
      %55 = vector.broadcast %cst_29 : f32 to vector<1x8x128xf32>
      %c0_30 = arith.constant 0 : index
      %c0_31 = arith.constant 0 : index
      %c0_32 = arith.constant 0 : index
      %56 = vector.load %arg5[%c0_30, %c0_31, %c0_32] : memref<1x8x128xf32, #tpu.memory_space<vmem>>, vector<1x8x128xf32>
      tpu.vector_store %arg5[%c0_30, %c0_31, %c0_32], %55 {strides = array<i32>} : memref<1x8x128xf32, #tpu.memory_space<vmem>>, vector<1x8x128xf32>,
    } else {
    }
    %c0 = arith.constant 0 : index
    %c0_1 = arith.constant 0 : index
    %3 = vector.load %arg2[%c0, %c0_1] : memref<8x32xf32, #tpu.memory_space<vmem>>, vector<8x32xf32>
    %c0_2 = arith.constant 0 : index
    %c0_3 = arith.constant 0 : index
    %4 = vector.load %arg3[%c0_2, %c0_3] : memref<8x1xi32, #tpu.memory_space<vmem>>, vector<8x1xi32>
    %cst = arith.constant dense<0xFF800000> : vector<8xf32>
    %5 = vector.multi_reduction <maximumf>, %3, %cst [1] : vector<8x32xf32> to vector<8xf32>
    %6 = vector.shape_cast %5 : vector<8xf32> to vector<8x1xf32>
    %7 = vector.broadcast %6 : vector<8x1xf32> to vector<8x32xf32>
    %8 = arith.subf %3, %7 : vector<8x32xf32>
    %9 = math.exp %8 : vector<8x32xf32>
    %cst_4 = arith.constant dense<0.000000e+00> : vector<8xf32>
    %10 = vector.multi_reduction <add>, %9, %cst_4 [1] : vector<8x32xf32> to vector<8xf32>
    %11 = vector.shape_cast %10 : vector<8xf32> to vector<8x1xf32>
    %12 = math.log %11 : vector<8x1xf32>
    %13 = tpu.iota {dimensions = array<i32: 1>} : vector<1x32xi32>
    %14 = vector.broadcast %13 : vector<1x32xi32> to vector<8x32xi32>
    %15 = vector.broadcast %4 : vector<8x1xi32> to vector<8x32xi32>
    %16 = arith.cmpi eq, %14, %15 : vector<8x32xi32>
    %cst_5 = arith.constant 0.899999976 : f32
    %cst_6 = arith.constant 0.0032258064 : f32
    %17 = vector.broadcast %cst_5 : f32 to vector<8x32xf32>
    %18 = vector.broadcast %cst_6 : f32 to vector<8x32xf32>
    %19 = arith.select %16, %17, %18 : vector<8x32xi1>, vector<8x32xf32>
    %20 = arith.mulf %8, %19 : vector<8x32xf32>
    %cst_7 = arith.constant dense<0.000000e+00> : vector<8xf32>
    %21 = vector.multi_reduction <add>, %20, %cst_7 [1] : vector<8x32xf32> to vector<8xf32>
    %22 = vector.shape_cast %21 : vector<8xf32> to vector<8x1xf32>
    %23 = arith.subf %12, %22 : vector<8x1xf32>
    %c1_i32 = arith.constant 1 : i32
    %24 = arith.muli %arg0, %c1_i32 : i32
    %25 = arith.addi %24, %arg1 : i32
    %c8_i32 = arith.constant 8 : i32
    %26 = arith.muli %25, %c8_i32 : i32
    %27 = tpu.iota {dimensions = array<i32: 0>} : vector<8x1xi32>
    %28 = vector.broadcast %26 : i32 to vector<8x1xi32>
    %29 = arith.addi %28, %27 : vector<8x1xi32>
    %c8_i32_8 = arith.constant 8 : i32
    %30 = vector.broadcast %c8_i32_8 : i32 to vector<8x1xi32>
    %31 = arith.cmpi slt, %29, %30 : vector<8x1xi32>
    %c0_i32_9 = arith.constant 0 : i32
    %32 = vector.broadcast %c0_i32_9 : i32 to vector<8x1xi32>
    %33 = arith.cmpi ne, %4, %32 : vector<8x1xi32>
    %34 = arith.andi %31, %33 : vector<8x1xi1>
    %cst_10 = arith.constant 0.000000e+00 : f32
    %35 = vector.broadcast %cst_10 : f32 to vector<8x1xf32>
    %36 = arith.select %34, %23, %35 : vector<8x1xi1>, vector<8x1xf32>
    %cst_11 = arith.constant dense<0.000000e+00> : vector<1xf32>
    %37 = vector.multi_reduction <add>, %36, %cst_11 [0] : vector<8x1xf32> to vector<1xf32>
    %38 = vector.shape_cast %37 : vector<1xf32> to vector<1x1xf32>
    %39 = arith.extui %34 : vector<8x1xi1> to vector<8x1xi32>
    %40 = arith.sitofp %39 : vector<8x1xi32> to vector<8x1xf32>
    %cst_12 = arith.constant dense<0.000000e+00> : vector<1xf32>
    %41 = vector.multi_reduction <add>, %40, %cst_12 [0] : vector<8x1xf32> to vector<1xf32>
    %42 = vector.shape_cast %41 : vector<1xf32> to vector<1x1xf32>
    %c0_13 = arith.constant 0 : index
    %c0_14 = arith.constant 0 : index
    %c0_15 = arith.constant 0 : index
    %43 = vector.load %arg4[%c0_13, %c0_14, %c0_15] : memref<1x8x128xf32, #tpu.memory_space<vmem>>, vector<1x8x128xf32>
    %44 = vector.shape_cast %38 : vector<1x1xf32> to vector<1x1x1xf32>
    %45 = vector.broadcast %44 : vector<1x1x1xf32> to vector<1x8x128xf32>
    %46 = arith.addf %43, %45 : vector<1x8x128xf32>
    %c0_16 = arith.constant 0 : index
    %c0_17 = arith.constant 0 : index
    %c0_18 = arith.constant 0 : index
    %47 = vector.load %arg4[%c0_16, %c0_17, %c0_18] : memref<1x8x128xf32, #tpu.memory_space<vmem>>, vector<1x8x128xf32>
    tpu.vector_store %arg4[%c0_16, %c0_17, %c0_18], %46 {strides = array<i32>} : memref<1x8x128xf32, #tpu.memory_space<vmem>>, vector<1x8x128xf32>,
    %c0_19 = arith.constant 0 : index
    %c0_20 = arith.constant 0 : index
    %c0_21 = arith.constant 0 : index
    %48 = vector.load %arg5[%c0_19, %c0_20, %c0_21] : memref<1x8x128xf32, #tpu.memory_space<vmem>>, vector<1x8x128xf32>
    %49 = vector.shape_cast %42 : vector<1x1xf32> to vector<1x1x1xf32>
    %50 = vector.broadcast %49 : vector<1x1x1xf32> to vector<1x8x128xf32>
    %51 = arith.addf %48, %50 : vector<1x8x128xf32>
    %c0_22 = arith.constant 0 : index
    %c0_23 = arith.constant 0 : index
    %c0_24 = arith.constant 0 : index
    %52 = vector.load %arg5[%c0_22, %c0_23, %c0_24] : memref<1x8x128xf32, #tpu.memory_space<vmem>>, vector<1x8x128xf32>
    tpu.vector_store %arg5[%c0_22, %c0_23, %c0_24], %51 {strides = array<i32>} : memref<1x8x128xf32, #tpu.memory_space<vmem>>, vector<1x8x128xf32>,
    return
  }
  func.func @transform_0(%arg0: i32, %arg1: i32) -> (i32, i32) {
    %c1_i32 = arith.constant 1 : i32
    %0 = arith.muli %arg0, %c1_i32 : i32
    %1 = arith.addi %0, %arg1 : i32
    %c0_i32 = arith.constant 0 : i32
    %2 = arith.minsi %1, %c0_i32 : i32
    %c0_i32_0 = arith.constant 0 : i32
    %c0_i32_1 = arith.constant 0 : i32
    return %2, %c0_i32_0 : i32, i32
  }
  func.func @transform_1(%arg0: i32, %arg1: i32) -> (i32, i32) {
    %c1_i32 = arith.constant 1 : i32
    %0 = arith.muli %arg0, %c1_i32 : i32
    %1 = arith.addi %0, %arg1 : i32
    %c0_i32 = arith.constant 0 : i32
    %2 = arith.minsi %1, %c0_i32 : i32
    %c0_i32_0 = arith.constant 0 : i32
    %c0_i32_1 = arith.constant 0 : i32
    return %2, %c0_i32_0 : i32, i32
  }
  func.func @transform_2(%arg0: i32, %arg1: i32) -> (i32, i32, i32) {
    %c0_i32 = arith.constant 0 : i32
    %c0_i32_0 = arith.constant 0 : i32
    %c0_i32_1 = arith.constant 0 : i32
    return %arg0, %c0_i32, %c0_i32_0 : i32, i32, i32
  }
  func.func @transform_3(%arg0: i32, %arg1: i32) -> (i32, i32, i32) {
    %c0_i32 = arith.constant 0 : i32
    %c0_i32_0 = arith.constant 0 : i32
    %c0_i32_1 = arith.constant 0 : i32
    return %arg0, %c0_i32, %c0_i32_0 : i32, i32, i32
  }
}

</mosaic_0001>

<bundles_post_ra>
// kernel: tpu_custom_call.1
= control target key start
LH: loop header
LB: loop body
LE: loop exit
PB: predicated region body
PF: predicated region fallthrough
CT: control target
= control target key end

     0   :  { %9 = vsyncpa [#allocation3], 0  ;;  %vm77_vm0 = vcmask 261120   ;;  %v252_v2 = vmov 0   ;;  %s292_s0 = inlined_call_operand.vmem [shape: f32[8,32], index: 0, kind: input, shape index: {}]   ;;  %s293_s1 = inlined_call_operand.vmem [shape: s32[8,1], index: 1, kind: input, shape index: {}]   ;;  %s294_s2 = inlined_call_operand.hbm [shape: f32[1,8,128], index: 2, kind: output, shape index: {0}]   ;;  %s295_s3 = inlined_call_operand.hbm [shape: f32[1,8,128], index: 3, kind: output, shape index: {1}]  }
   0x1   :  { %v75_v0 = vld [vmem:[%s292_s0] sm:$0xff]  ;;  %194 = vset.pattern.permute.xlu0 %v252_v2  ;;  %195 = vset.pattern.permute.xlu2 %v252_v2 }
   0x2   :  { %v78_v1 = vsel %vm77_vm0, %v75_v0, -inf }
   0x3   :  { %10 = vsyncpa [#allocation5], 0  ;;  %79 = vmax.xlane.f32.xlu0 %v78_v1  ;;  %v76_v3 = vld [vmem:[%s293_s1] sm:$0xff]  ;;  %v89_v9 = vlaneseq  ;;  %v253_v12 = vmov 0.0032258064   ;;  %v254_v17 = vmov 0.0  }
   0x4   :  { %vm108_vm2 = vcmp.ne.s32.totalorder %v76_v3, 0  ;;  %vm111_vm3 = vcmask 7168   ;;  %s255_s0 = smov [#allocation2]   ;;  %s151_s18 = sshll.u32 %s294_s2, 4  ;;  %s152_s18 = int_to_ptr.hbm [resolvable:$true] %s151_s18 }
   0x5   :  { %v90_v10 = vand.u32 127, %v89_v9  ;;  %v188_v18 = vsel %vm108_vm2, 1.0, %v254_v17  ;;  %s149_s1 = sshll.u32 %s255_s0, 4  ;;  %s256_s19 = smov [#allocation4]   ;;  %s150_s1 = int_to_ptr.vmem [resolvable:$true] %s149_s1 }
   0x6   :  { %v121_v20 = vsel %vm111_vm3, %v188_v18, 0.0  ;;  %s160_s20 = sshll.u32 %s256_s19, 4  ;;  %s162_s23 = sshll.u32 %s295_s3, 4  ;;  %s161_s20 = int_to_ptr.vmem [resolvable:$true] %s160_s20  ;;  %s163_s23 = int_to_ptr.hbm [resolvable:$true] %s162_s23 }
   0x7   :  { %v122_v24 = vrot.slane %v121_v20, 4 }
   0x9   :  { %v123_v28 = vadd.f32 %v122_v24, %v121_v20 }
   0xb   :  { %v124_v31 = vrot.slane %v123_v28, 2 }
   0xd   :  { %v125_v34 = vadd.f32 %v124_v31, %v123_v28 }
   0xf   :  { %v126_v36 = vrot.slane %v125_v34, 1 }
  0x11   :  { %v127_v37 = vadd.f32 %v126_v36, %v125_v34 }
  0x17   :  { %92 = vperm.xlu0 %194, %v76_v3  }
  0x76   :  { %v80_v4 = vpop.xlane.xlu0 %79 }
  0x77   :  { %v81_v5 = vsub.f32 %v75_v0, %v80_v4 }
  0x79   :  { %v82_v6 = vmul.f32 1.442695, %v81_v5 }
  0x7b   :  { %196 = vpow2.f32 %v82_v6 }
  0x81   :  { %v197_v7 = vpop.eup %196 }
  0x82   :  { %v84_v8 = vsel %vm77_vm0, %v197_v7, 0.0 }
  0x83   :  { %85 = vadd.xlane.f32.xlu1 %v84_v8 }
  0x89   :  { %v93_v11 = vpop.permute.xlu0 %92 }
  0x8a   :  { %vm94_vm1 = vcmp.eq.s32.totalorder %v90_v10, %v93_v11 }
  0x8b   :  { %v95_v13 = vsel %vm94_vm1, 0.9, %v253_v12 }
  0x8c   :  { %v96_v14 = vmul.f32 %v95_v13, %v81_v5 }
  0x8e   :  { %v97_v15 = vsel %vm77_vm0, %v96_v14, 0.0 }
  0x8f   :  { %98 = vadd.xlane.f32.xlu1 %v97_v15 }
  0xf6   :  { %v86_v16 = vpop.xlane.xlu1 %85 }
  0xf7   :  { %198 = vlog2.f32 %v86_v16 }
  0xfd   :  { %v199_v19 = vpop.eup %198 }
  0xfe   :  { %v88_v21 = vmul.f32 0.6931472, %v199_v19 }
 0x102   :  { %v99_v22 = vpop.xlane.xlu1 %98 }
 0x103   :  { %v100_v23 = vsub.f32 %v88_v21, %v99_v22 }
 0x105   :  { %v110_v25 = vsel %vm108_vm2, %v100_v23, 0.0 }
 0x106   :  { %v112_v26 = vsel %vm111_vm3, %v110_v25, 0.0 }
 0x107   :  { %v113_v27 = vrot.slane %v112_v26, 4 }
 0x109   :  { %v114_v29 = vadd.f32 %v113_v27, %v112_v26 }
 0x10b   :  { %v115_v30 = vrot.slane %v114_v29, 2 }
 0x10d   :  { %v116_v32 = vadd.f32 %v115_v30, %v114_v29 }
 0x10f   :  { %v117_v33 = vrot.slane %v116_v32, 1 }
 0x111   :  { %v118_v35 = vadd.f32 %v117_v33, %v116_v32 }
 0x113   :  { %131 = vperm.xlu2 %195, %v118_v35  }
 0x11b   :  { %139 = vperm.xlu2 %195, %v127_v37  }
 0x16d   :  { %v132_v38 = vpop.permute.xlu2 %131 }
 0x16e   :  { %135 = vst [vmem:[#allocation2] sm:$0xff] %v132_v38 }
 0x16f   :  { %154 = dma.vmem_to_hbm [thread:$0]  %s150_s1, 128, %s152_s18, [#allocation3]  }
 0x175   :  { %v140_v39 = vpop.permute.xlu2 %139 }
 0x176   :  { %143 = vst [vmem:[#allocation4] sm:$0xff] %v140_v39 }
 0x177   :  { %165 = dma.vmem_to_hbm [thread:$0]  %s161_s20, 128, %s163_s23, [#allocation5]  }
 0x178   :  { %248 = dma.done.wait [#allocation3], 128  }
 0x179   :  { %249 = vsyncadd [#allocation3], 4294967168 }
 0x17a   :  { %250 = dma.done.wait [#allocation5], 128  }
 0x17b   :  { %251 = vsyncadd [#allocation5], 4294967168 }
 0x17c   :  { %174 = vsyncpa [#allocation3], 1 }
 0x17d   :  { %175 = vsyncpa [#allocation5], 1 }

</bundles_post_ra>
